<compile_context>
chip_gen: v5e
topology: v5e:2x2
jax: 0.10.0
libtpu: 0.0.40
codegen_flags: <defaults>
</compile_context>

<pallas_src>
import numpy as np
import jax
import jax.numpy as jnp
from jax import lax
from jax.experimental import pallas as pl
from jax.experimental.pallas import tpu as pltpu


def basic_block_kernel(x_ref, w1_ref, w2_ref, sb_ref, out_ref, xin_s, mid_s):
    # x_ref : (N, H, W*C)   lane-dense input rows, lane layout w*C + c
    # w1_ref: (3, W*C, W*P) banded conv1 weight (one matrix per kernel row,
    #                       width zero-padding folded into the band structure)
    # w2_ref: (3, W*P, W*P) banded conv2 weight
    # sb_ref: (4, W*P)      packed folded BN params: rows = [s1, b1, s2, b2]
    # out_ref: (N, H, W*P)  lane-dense output
    # xin_s : (N, H+2, W*C) VMEM scratch, H-halo'd input
    # mid_s : (N, H+2, W*P) VMEM scratch, H-halo'd conv1 output
    N, H, WC = x_ref.shape
    WP = out_ref.shape[2]
    NH = N * H

    s1 = sb_ref[0:1, :]
    b1 = sb_ref[1:2, :]
    s2 = sb_ref[2:3, :]
    b2 = sb_ref[3:4, :]

    # ---- stage input with zero H-halo rows (width padding is in the band) ---
    zx = jnp.zeros((N, 1, WC), jnp.float32)
    xin_s[:, 0:1, :] = zx
    xin_s[:, H + 1:H + 2, :] = zx
    xin_s[:, 1:H + 1, :] = x_ref[...]

    # ---- conv1: three banded matmuls, N folded into M (M = N*H) ------------
    acc1 = jnp.dot(xin_s[:, 0:H, :].reshape(NH, WC), w1_ref[0],
                   preferred_element_type=jnp.float32)
    acc1 = acc1 + jnp.dot(xin_s[:, 1:H + 1, :].reshape(NH, WC), w1_ref[1],
                          preferred_element_type=jnp.float32)
    acc1 = acc1 + jnp.dot(xin_s[:, 2:H + 2, :].reshape(NH, WC), w1_ref[2],
                          preferred_element_type=jnp.float32)
    # bn1 (folded, eval mode) + relu
    y1 = jnp.maximum(acc1 * s1 + b1, 0.0)

    # ---- stage conv1 output with zero H-halo rows ---------------------------
    zm = jnp.zeros((N, 1, WP), jnp.float32)
    mid_s[:, 0:1, :] = zm
    mid_s[:, H + 1:H + 2, :] = zm
    mid_s[:, 1:H + 1, :] = y1.reshape(N, H, WP)

    # ---- conv2: three banded matmuls (chained-dot form for MRB accumulate) --
    acc2 = jnp.dot(mid_s[:, 0:H, :].reshape(NH, WP), w2_ref[0],
                   preferred_element_type=jnp.float32)
    acc2 = acc2 + jnp.dot(mid_s[:, 1:H + 1, :].reshape(NH, WP), w2_ref[1],
                          preferred_element_type=jnp.float32)
    acc2 = acc2 + jnp.dot(mid_s[:, 2:H + 2, :].reshape(NH, WP), w2_ref[2],
                          preferred_element_type=jnp.float32)

    # bn2 (folded) + residual add (downsample=None, stride=1, C==P) + relu
    y2 = acc2 * s2 + b2
    out_ref[...] = jnp.maximum(y2.reshape(N, H, WP) + x_ref[...], 0.0)


def _banded_conv_weight(w_hwio, width):
    """Fold a 3x3 HWIO conv weight into per-kernel-row banded matrices.

    Returns B of shape (KH, width*Cin, width*Cout) with
        B[dy, wi*Cin + c, wo*Cout + p] = w_hwio[dy, wi - wo + 1, c, p]
    whenever 0 <= wi - wo + 1 < KW, else 0.  Multiplying a lane-dense image
    row x_row[wi*Cin + c] by B[dy] applies kernel row dy of a stride-1, pad-1
    conv with the width zero padding handled implicitly.
    """
    w = np.asarray(w_hwio, dtype=np.float32)
    KH, KW, Cin, Cout = w.shape
    B = np.zeros((KH, width * Cin, width * Cout), np.float32)
    for wo in range(width):
        for dx in range(KW):
            wi = wo + dx - (KW // 2)
            if 0 <= wi < width:
                B[:, wi * Cin:(wi + 1) * Cin,
                  wo * Cout:(wo + 1) * Cout] = w[:, dx]
    return jnp.asarray(B)


def prepare_basic_block_params(w1_hwio, w2_hwio, scale1, bias1, scale2, bias2,
                               width):
    """One-time (cacheable) prep: banded weights + packed, lane-tiled BN params."""
    w1b = _banded_conv_weight(w1_hwio, width)          # (3, W*C, W*P)
    w2b = _banded_conv_weight(w2_hwio, width)          # (3, W*P, W*P)
    sb = jnp.stack([jnp.tile(jnp.asarray(scale1, jnp.float32), width),
                    jnp.tile(jnp.asarray(bias1, jnp.float32), width),
                    jnp.tile(jnp.asarray(scale2, jnp.float32), width),
                    jnp.tile(jnp.asarray(bias2, jnp.float32), width)], axis=0)
    return w1b, w2b, sb


def basic_block(x_nhwc, w1b, w2b, sb):
    """BasicBlock forward. x_nhwc: (N,H,W,C) f32 -> (N,H,W,P) f32."""
    N, H, W, C = x_nhwc.shape
    WP = w1b.shape[-1]
    WC = W * C
    P = WP // W
    assert C == P, "downsample=None requires inplanes == planes"
    assert WC == 128 and WP == 128, \
        "lane-dense layout requires W*C == W*P == 128"

    # Lane-dense rows: pure (free) reshape, no im2col materialization.
    xrow = x_nhwc.reshape(N, H, WC).astype(jnp.float32)

    out = pl.pallas_call(
        basic_block_kernel,
        out_shape=jax.ShapeDtypeStruct((N, H, WP), jnp.float32),
        grid_spec=pltpu.PrefetchScalarGridSpec(
            num_scalar_prefetch=0,
            grid=(1,),                       # single step; N folded into M
            in_specs=[
                pl.BlockSpec((N, H, WC), lambda i: (0, 0, 0)),
                pl.BlockSpec((3, WC, WP), lambda i: (0, 0, 0)),
                pl.BlockSpec((3, WP, WP), lambda i: (0, 0, 0)),
                pl.BlockSpec((4, WP), lambda i: (0, 0)),
            ],
            out_specs=pl.BlockSpec((N, H, WP), lambda i: (0, 0, 0)),
            scratch_shapes=[pltpu.VMEM((N, H + 2, WC), jnp.float32),
                            pltpu.VMEM((N, H + 2, WP), jnp.float32)],
        ),
        compiler_params=pltpu.CompilerParams(
            dimension_semantics=("arbitrary",)),
    )(xrow, w1b, w2b, sb)

    return out.reshape(N, H, W, P)


def ref_block(x_nhwc, w1_hwio, w2_hwio, s1, b1, s2, b2):
    """Pure-JAX reference (NHWC / HWIO convs, SAME padding)."""
    dn = lax.conv_dimension_numbers(x_nhwc.shape, w1_hwio.shape,
                                    ('NHWC', 'HWIO', 'NHWC'))
    y = lax.conv_general_dilated(x_nhwc, w1_hwio, (1, 1), 'SAME',
                                 dimension_numbers=dn)
    y = jnp.maximum(y * s1 + b1, 0.0)
    y = lax.conv_general_dilated(y, w2_hwio, (1, 1), 'SAME',
                                 dimension_numbers=dn)
    y = y * s2 + b2
    return jnp.maximum(y + x_nhwc, 0.0)


if __name__ == "__main__":
    # Module config: BasicBlock(inplanes=8, planes=8, stride=1, downsample=None)
    N, C, H, W = 2, 8, 16, 16
    P = 8
    eps = 1e-5

    key = jax.random.PRNGKey(0)
    kx, kw1, kw2, kg1, kb1, km1, kv1, kg2, kb2, km2, kv2 = jax.random.split(key, 11)

    # PyTorch-native layouts: x is NCHW, conv weights are OIHW.
    x_nchw = jax.random.normal(kx, (N, C, H, W), jnp.float32)
    w1_oihw = jax.random.normal(kw1, (P, C, 3, 3), jnp.float32) * 0.2
    w2_oihw = jax.random.normal(kw2, (P, P, 3, 3), jnp.float32) * 0.2

    # BatchNorm parameters (deterministic, non-trivial), folded for eval mode.
    gamma1 = 1.0 + 0.1 * jax.random.normal(kg1, (P,), jnp.float32)
    beta1 = 0.1 * jax.random.normal(kb1, (P,), jnp.float32)
    mean1 = 0.1 * jax.random.normal(km1, (P,), jnp.float32)
    var1 = 1.0 + 0.1 * jax.random.uniform(kv1, (P,), jnp.float32)
    gamma2 = 1.0 + 0.1 * jax.random.normal(kg2, (P,), jnp.float32)
    beta2 = 0.1 * jax.random.normal(kb2, (P,), jnp.float32)
    mean2 = 0.1 * jax.random.normal(km2, (P,), jnp.float32)
    var2 = 1.0 + 0.1 * jax.random.uniform(kv2, (P,), jnp.float32)

    scale1 = gamma1 / jnp.sqrt(var1 + eps)
    bias1 = beta1 - mean1 * scale1
    scale2 = gamma2 / jnp.sqrt(var2 + eps)
    bias2 = beta2 - mean2 * scale2

    # Layout conversion (glue): NCHW -> NHWC, OIHW -> HWIO.
    x_nhwc = jnp.transpose(x_nchw, (0, 2, 3, 1))
    w1_hwio = jnp.transpose(w1_oihw, (2, 3, 1, 0))
    w2_hwio = jnp.transpose(w2_oihw, (2, 3, 1, 0))

    # One-time parameter prep (hoisted out of the per-forward path; cache this).
    w1b, w2b, sb = prepare_basic_block_params(
        w1_hwio, w2_hwio, scale1, bias1, scale2, bias2, W)

    out = basic_block(x_nhwc, w1b, w2b, sb)
    out = jax.block_until_ready(out)

    ref = ref_block(x_nhwc, w1_hwio, w2_hwio,
                    scale1.reshape(1, 1, 1, P), bias1.reshape(1, 1, 1, P),
                    scale2.reshape(1, 1, 1, P), bias2.reshape(1, 1, 1, P))
    ref = jax.block_until_ready(ref)

    assert out.shape == (N, H, W, P)
    err = float(jnp.max(jnp.abs(out - ref)))
    assert err < 2e-3, err

    print("KERNEL_OK")
</pallas_src>

<mosaic_0001>
module attributes {stable_mosaic.version = 11 : i64} {
  func.func @basic_block_kernel(%arg0: i32, %arg1: memref<2x16x128xf32, #tpu.memory_space<vmem>>, %arg2: memref<3x128x128xf32, #tpu.memory_space<vmem>>, %arg3: memref<3x128x128xf32, #tpu.memory_space<vmem>>, %arg4: memref<4x128xf32, #tpu.memory_space<vmem>>, %arg5: memref<2x16x128xf32, #tpu.memory_space<vmem>>, %arg6: memref<2x18x128xf32, #tpu.memory_space<vmem>>, %arg7: memref<2x18x128xf32, #tpu.memory_space<vmem>>) attributes {dimension_semantics = [#tpu.dimension_semantics<arbitrary>], iteration_bounds = array<i64: 1>, scalar_prefetch = 0 : i64, scratch_operands = 2 : i64, tpu.core_type = #tpu.core_type<tc>, window_params = [{pipeline_mode = #tpu.pipeline_mode<synchronous>, transform_indices = @transform_0, window_bounds = array<i64: 2, 16, 128>}, {pipeline_mode = #tpu.pipeline_mode<synchronous>, transform_indices = @transform_1, window_bounds = array<i64: 3, 128, 128>}, {pipeline_mode = #tpu.pipeline_mode<synchronous>, transform_indices = @transform_2, window_bounds = array<i64: 3, 128, 128>}, {pipeline_mode = #tpu.pipeline_mode<synchronous>, transform_indices = @transform_3, window_bounds = array<i64: 4, 128>}, {pipeline_mode = #tpu.pipeline_mode<synchronous>, transform_indices = @transform_4, window_bounds = array<i64: 2, 16, 128>}]} {
    %c0 = arith.constant 0 : index
    %c0_0 = arith.constant 0 : index
    %0 = vector.load %arg4[%c0, %c0_0] : memref<4x128xf32, #tpu.memory_space<vmem>>, vector<1x128xf32>
    %c1 = arith.constant 1 : index
    %c0_1 = arith.constant 0 : index
    %1 = vector.load %arg4[%c1, %c0_1] : memref<4x128xf32, #tpu.memory_space<vmem>>, vector<1x128xf32>
    %c2 = arith.constant 2 : index
    %c0_2 = arith.constant 0 : index
    %2 = vector.load %arg4[%c2, %c0_2] : memref<4x128xf32, #tpu.memory_space<vmem>>, vector<1x128xf32>
    %c3 = arith.constant 3 : index
    %c0_3 = arith.constant 0 : index
    %3 = vector.load %arg4[%c3, %c0_3] : memref<4x128xf32, #tpu.memory_space<vmem>>, vector<1x128xf32>
    %cst = arith.constant 0.000000e+00 : f32
    %4 = vector.broadcast %cst : f32 to vector<2x1x128xf32>
    %c0_4 = arith.constant 0 : index
    %c0_5 = arith.constant 0 : index
    %c0_6 = arith.constant 0 : index
    %5 = vector.load %arg6[%c0_4, %c0_5, %c0_6] : memref<2x18x128xf32, #tpu.memory_space<vmem>>, vector<2x1x128xf32>
    tpu.vector_store %arg6[%c0_4, %c0_5, %c0_6], %4 {strides = array<i32>} : memref<2x18x128xf32, #tpu.memory_space<vmem>>, vector<2x1x128xf32>,
    %c0_7 = arith.constant 0 : index
    %c17 = arith.constant 17 : index
    %c0_8 = arith.constant 0 : index
    %6 = vector.load %arg6[%c0_7, %c17, %c0_8] : memref<2x18x128xf32, #tpu.memory_space<vmem>>, vector<2x1x128xf32>
    tpu.vector_store %arg6[%c0_7, %c17, %c0_8], %4 {strides = array<i32>} : memref<2x18x128xf32, #tpu.memory_space<vmem>>, vector<2x1x128xf32>,
    %c0_9 = arith.constant 0 : index
    %c0_10 = arith.constant 0 : index
    %c0_11 = arith.constant 0 : index
    %7 = vector.load %arg1[%c0_9, %c0_10, %c0_11] : memref<2x16x128xf32, #tpu.memory_space<vmem>>, vector<2x16x128xf32>
    %c0_12 = arith.constant 0 : index
    %c1_13 = arith.constant 1 : index
    %c0_14 = arith.constant 0 : index
    %8 = vector.load %arg6[%c0_12, %c1_13, %c0_14] : memref<2x18x128xf32, #tpu.memory_space<vmem>>, vector<2x16x128xf32>
    tpu.vector_store %arg6[%c0_12, %c1_13, %c0_14], %7 {strides = array<i32>} : memref<2x18x128xf32, #tpu.memory_space<vmem>>, vector<2x16x128xf32>,
    %c0_15 = arith.constant 0 : index
    %c0_16 = arith.constant 0 : index
    %c0_17 = arith.constant 0 : index
    %9 = vector.load %arg6[%c0_15, %c0_16, %c0_17] : memref<2x18x128xf32, #tpu.memory_space<vmem>>, vector<2x16x128xf32>
    %10 = vector.shape_cast %9 : vector<2x16x128xf32> to vector<32x128xf32>
    %c0_18 = arith.constant 0 : index
    %c0_19 = arith.constant 0 : index
    %c0_20 = arith.constant 0 : index
    %11 = vector.load %arg2[%c0_18, %c0_19, %c0_20] : memref<3x128x128xf32, #tpu.memory_space<vmem>>, vector<1x128x128xf32>
    %12 = vector.shape_cast %11 : vector<1x128x128xf32> to vector<128x128xf32>
    %cst_21 = arith.constant dense<0.000000e+00> : vector<32x128xf32>
    %13 = tpu.matmul %10, %12, %cst_21 {dimension_numbers = #tpu.dot_dimension_numbers<[1], [0], [0], [1], [0, 0, 1, 1], [], []>} : vector<32x128xf32>, vector<128x128xf32>, vector<32x128xf32> -> vector<32x128xf32>
    %c0_22 = arith.constant 0 : index
    %c1_23 = arith.constant 1 : index
    %c0_24 = arith.constant 0 : index
    %14 = vector.load %arg6[%c0_22, %c1_23, %c0_24] : memref<2x18x128xf32, #tpu.memory_space<vmem>>, vector<2x16x128xf32>
    %15 = vector.shape_cast %14 : vector<2x16x128xf32> to vector<32x128xf32>
    %c1_25 = arith.constant 1 : index
    %c0_26 = arith.constant 0 : index
    %c0_27 = arith.constant 0 : index
    %16 = vector.load %arg2[%c1_25, %c0_26, %c0_27] : memref<3x128x128xf32, #tpu.memory_space<vmem>>, vector<1x128x128xf32>
    %17 = vector.shape_cast %16 : vector<1x128x128xf32> to vector<128x128xf32>
    %cst_28 = arith.constant dense<0.000000e+00> : vector<32x128xf32>
    %18 = tpu.matmul %15, %17, %cst_28 {dimension_numbers = #tpu.dot_dimension_numbers<[1], [0], [0], [1], [0, 0, 1, 1], [], []>} : vector<32x128xf32>, vector<128x128xf32>, vector<32x128xf32> -> vector<32x128xf32>
    %19 = arith.addf %13, %18 : vector<32x128xf32>
    %c0_29 = arith.constant 0 : index
    %c2_30 = arith.constant 2 : index
    %c0_31 = arith.constant 0 : index
    %20 = vector.load %arg6[%c0_29, %c2_30, %c0_31] : memref<2x18x128xf32, #tpu.memory_space<vmem>>, vector<2x16x128xf32>
    %21 = vector.shape_cast %20 : vector<2x16x128xf32> to vector<32x128xf32>
    %c2_32 = arith.constant 2 : index
    %c0_33 = arith.constant 0 : index
    %c0_34 = arith.constant 0 : index
    %22 = vector.load %arg2[%c2_32, %c0_33, %c0_34] : memref<3x128x128xf32, #tpu.memory_space<vmem>>, vector<1x128x128xf32>
    %23 = vector.shape_cast %22 : vector<1x128x128xf32> to vector<128x128xf32>
    %cst_35 = arith.constant dense<0.000000e+00> : vector<32x128xf32>
    %24 = tpu.matmul %21, %23, %cst_35 {dimension_numbers = #tpu.dot_dimension_numbers<[1], [0], [0], [1], [0, 0, 1, 1], [], []>} : vector<32x128xf32>, vector<128x128xf32>, vector<32x128xf32> -> vector<32x128xf32>
    %25 = arith.addf %19, %24 : vector<32x128xf32>
    %26 = vector.broadcast %0 : vector<1x128xf32> to vector<32x128xf32>
    %27 = arith.mulf %25, %26 : vector<32x128xf32>
    %28 = vector.broadcast %1 : vector<1x128xf32> to vector<32x128xf32>
    %29 = arith.addf %27, %28 : vector<32x128xf32>
    %cst_36 = arith.constant 0.000000e+00 : f32
    %30 = vector.broadcast %cst_36 : f32 to vector<32x128xf32>
    %31 = arith.maximumf %29, %30 : vector<32x128xf32>
    %cst_37 = arith.constant 0.000000e+00 : f32
    %32 = vector.broadcast %cst_37 : f32 to vector<2x1x128xf32>
    %c0_38 = arith.constant 0 : index
    %c0_39 = arith.constant 0 : index
    %c0_40 = arith.constant 0 : index
    %33 = vector.load %arg7[%c0_38, %c0_39, %c0_40] : memref<2x18x128xf32, #tpu.memory_space<vmem>>, vector<2x1x128xf32>
    tpu.vector_store %arg7[%c0_38, %c0_39, %c0_40], %32 {strides = array<i32>} : memref<2x18x128xf32, #tpu.memory_space<vmem>>, vector<2x1x128xf32>,
    %c0_41 = arith.constant 0 : index
    %c17_42 = arith.constant 17 : index
    %c0_43 = arith.constant 0 : index
    %34 = vector.load %arg7[%c0_41, %c17_42, %c0_43] : memref<2x18x128xf32, #tpu.memory_space<vmem>>, vector<2x1x128xf32>
    tpu.vector_store %arg7[%c0_41, %c17_42, %c0_43], %32 {strides = array<i32>} : memref<2x18x128xf32, #tpu.memory_space<vmem>>, vector<2x1x128xf32>,
    %35 = vector.shape_cast %31 : vector<32x128xf32> to vector<2x16x128xf32>
    %c0_44 = arith.constant 0 : index
    %c1_45 = arith.constant 1 : index
    %c0_46 = arith.constant 0 : index
    %36 = vector.load %arg7[%c0_44, %c1_45, %c0_46] : memref<2x18x128xf32, #tpu.memory_space<vmem>>, vector<2x16x128xf32>
    tpu.vector_store %arg7[%c0_44, %c1_45, %c0_46], %35 {strides = array<i32>} : memref<2x18x128xf32, #tpu.memory_space<vmem>>, vector<2x16x128xf32>,
    %c0_47 = arith.constant 0 : index
    %c0_48 = arith.constant 0 : index
    %c0_49 = arith.constant 0 : index
    %37 = vector.load %arg7[%c0_47, %c0_48, %c0_49] : memref<2x18x128xf32, #tpu.memory_space<vmem>>, vector<2x16x128xf32>
    %38 = vector.shape_cast %37 : vector<2x16x128xf32> to vector<32x128xf32>
    %c0_50 = arith.constant 0 : index
    %c0_51 = arith.constant 0 : index
    %c0_52 = arith.constant 0 : index
    %39 = vector.load %arg3[%c0_50, %c0_51, %c0_52] : memref<3x128x128xf32, #tpu.memory_space<vmem>>, vector<1x128x128xf32>
    %40 = vector.shape_cast %39 : vector<1x128x128xf32> to vector<128x128xf32>
    %cst_53 = arith.constant dense<0.000000e+00> : vector<32x128xf32>
    %41 = tpu.matmul %38, %40, %cst_53 {dimension_numbers = #tpu.dot_dimension_numbers<[1], [0], [0], [1], [0, 0, 1, 1], [], []>} : vector<32x128xf32>, vector<128x128xf32>, vector<32x128xf32> -> vector<32x128xf32>
    %c0_54 = arith.constant 0 : index
    %c1_55 = arith.constant 1 : index
    %c0_56 = arith.constant 0 : index
    %42 = vector.load %arg7[%c0_54, %c1_55, %c0_56] : memref<2x18x128xf32, #tpu.memory_space<vmem>>, vector<2x16x128xf32>
    %43 = vector.shape_cast %42 : vector<2x16x128xf32> to vector<32x128xf32>
    %c1_57 = arith.constant 1 : index
    %c0_58 = arith.constant 0 : index
    %c0_59 = arith.constant 0 : index
    %44 = vector.load %arg3[%c1_57, %c0_58, %c0_59] : memref<3x128x128xf32, #tpu.memory_space<vmem>>, vector<1x128x128xf32>
    %45 = vector.shape_cast %44 : vector<1x128x128xf32> to vector<128x128xf32>
    %cst_60 = arith.constant dense<0.000000e+00> : vector<32x128xf32>
    %46 = tpu.matmul %43, %45, %cst_60 {dimension_numbers = #tpu.dot_dimension_numbers<[1], [0], [0], [1], [0, 0, 1, 1], [], []>} : vector<32x128xf32>, vector<128x128xf32>, vector<32x128xf32> -> vector<32x128xf32>
    %47 = arith.addf %41, %46 : vector<32x128xf32>
    %c0_61 = arith.constant 0 : index
    %c2_62 = arith.constant 2 : index
    %c0_63 = arith.constant 0 : index
    %48 = vector.load %arg7[%c0_61, %c2_62, %c0_63] : memref<2x18x128xf32, #tpu.memory_space<vmem>>, vector<2x16x128xf32>
    %49 = vector.shape_cast %48 : vector<2x16x128xf32> to vector<32x128xf32>
    %c2_64 = arith.constant 2 : index
    %c0_65 = arith.constant 0 : index
    %c0_66 = arith.constant 0 : index
    %50 = vector.load %arg3[%c2_64, %c0_65, %c0_66] : memref<3x128x128xf32, #tpu.memory_space<vmem>>, vector<1x128x128xf32>
    %51 = vector.shape_cast %50 : vector<1x128x128xf32> to vector<128x128xf32>
    %cst_67 = arith.constant dense<0.000000e+00> : vector<32x128xf32>
    %52 = tpu.matmul %49, %51, %cst_67 {dimension_numbers = #tpu.dot_dimension_numbers<[1], [0], [0], [1], [0, 0, 1, 1], [], []>} : vector<32x128xf32>, vector<128x128xf32>, vector<32x128xf32> -> vector<32x128xf32>
    %53 = arith.addf %47, %52 : vector<32x128xf32>
    %54 = vector.broadcast %2 : vector<1x128xf32> to vector<32x128xf32>
    %55 = arith.mulf %53, %54 : vector<32x128xf32>
    %56 = vector.broadcast %3 : vector<1x128xf32> to vector<32x128xf32>
    %57 = arith.addf %55, %56 : vector<32x128xf32>
    %58 = vector.shape_cast %57 : vector<32x128xf32> to vector<2x16x128xf32>
    %c0_68 = arith.constant 0 : index
    %c0_69 = arith.constant 0 : index
    %c0_70 = arith.constant 0 : index
    %59 = vector.load %arg1[%c0_68, %c0_69, %c0_70] : memref<2x16x128xf32, #tpu.memory_space<vmem>>, vector<2x16x128xf32>
    %60 = arith.addf %58, %59 : vector<2x16x128xf32>
    %cst_71 = arith.constant 0.000000e+00 : f32
    %61 = vector.broadcast %cst_71 : f32 to vector<2x16x128xf32>
    %62 = arith.maximumf %60, %61 : vector<2x16x128xf32>
    %c0_72 = arith.constant 0 : index
    %c0_73 = arith.constant 0 : index
    %c0_74 = arith.constant 0 : index
    %63 = vector.load %arg5[%c0_72, %c0_73, %c0_74] : memref<2x16x128xf32, #tpu.memory_space<vmem>>, vector<2x16x128xf32>
    tpu.vector_store %arg5[%c0_72, %c0_73, %c0_74], %62 {strides = array<i32>} : memref<2x16x128xf32, #tpu.memory_space<vmem>>, vector<2x16x128xf32>,
    return
  }
  func.func @transform_0(%arg0: i32) -> (i32, i32, i32) {
    %c0_i32 = arith.constant 0 : i32
    %c0_i32_0 = arith.constant 0 : i32
    %c0_i32_1 = arith.constant 0 : i32
    %c0_i32_2 = arith.constant 0 : i32
    return %c0_i32, %c0_i32_0, %c0_i32_1 : i32, i32, i32
  }
  func.func @transform_1(%arg0: i32) -> (i32, i32, i32) {
    %c0_i32 = arith.constant 0 : i32
    %c0_i32_0 = arith.constant 0 : i32
    %c0_i32_1 = arith.constant 0 : i32
    %c0_i32_2 = arith.constant 0 : i32
    return %c0_i32, %c0_i32_0, %c0_i32_1 : i32, i32, i32
  }
  func.func @transform_2(%arg0: i32) -> (i32, i32, i32) {
    %c0_i32 = arith.constant 0 : i32
    %c0_i32_0 = arith.constant 0 : i32
    %c0_i32_1 = arith.constant 0 : i32
    %c0_i32_2 = arith.constant 0 : i32
    return %c0_i32, %c0_i32_0, %c0_i32_1 : i32, i32, i32
  }
  func.func @transform_3(%arg0: i32) -> (i32, i32) {
    %c0_i32 = arith.constant 0 : i32
    %c0_i32_0 = arith.constant 0 : i32
    %c0_i32_1 = arith.constant 0 : i32
    return %c0_i32, %c0_i32_0 : i32, i32
  }
  func.func @transform_4(%arg0: i32) -> (i32, i32, i32) {
    %c0_i32 = arith.constant 0 : i32
    %c0_i32_0 = arith.constant 0 : i32
    %c0_i32_1 = arith.constant 0 : i32
    %c0_i32_2 = arith.constant 0 : i32
    return %c0_i32, %c0_i32_0, %c0_i32_1 : i32, i32, i32
  }
}

</mosaic_0001>

<bundles_post_ra>
// kernel: tpu_custom_call.1
= control target key start
LH: loop header
LB: loop body
LE: loop exit
PB: predicated region body
PF: predicated region fallthrough
CT: control target
= control target key end

     0   :  { %9 = vsyncpa [#allocation5], 0  ;;  %s730_s0 = inlined_call_operand.hbm [shape: f32[2,16,128], index: 0, kind: input, shape index: {}]   ;;  %s731_s1 = inlined_call_operand.hbm [shape: f32[3,128,128], index: 1, kind: input, shape index: {}]   ;;  %s732_s2 = inlined_call_operand.hbm [shape: f32[3,128,128], index: 2, kind: input, shape index: {}]   ;;  %s733_s3 = inlined_call_operand.hbm [shape: f32[4,128], index: 3, kind: input, shape index: {}]   ;;  %s734_s4 = inlined_call_operand.hbm [shape: f32[2,16,128], index: 4, kind: output, shape index: {}]  }
   0x1   :  { %10 = vsyncpa [#allocation8], 0 }
   0x2   :  { %11 = vsyncpa [#allocation11], 0 }
   0x3   :  { %12 = vsyncpa [#allocation6], 0  ;;  %s30_s17 = sshll.u32 %s731_s1, 4  ;;  %s642_s18 = smov [#allocation7]   ;;  %s31_s17 = int_to_ptr.hbm [resolvable:$true] %s30_s17 }
   0x4   :  { %s32_s19 = sshll.u32 %s642_s18, 4  ;;  %s17_s22 = sshll.u32 %s730_s0, 4  ;;  %s33_s19 = int_to_ptr.vmem [resolvable:$true] %s32_s19  ;;  %s18_s22 = int_to_ptr.hbm [resolvable:$true] %s17_s22 }
   0x5   :  { %s643_s23 = smov 128   ;;  %s644_s24 = smov 8  }
   0x6   :  { %38 = dma.hbm_to_vmem [thread:$0]  %s31_s17, 6144, %s33_s19, [#allocation8], %s643_s23, %s643_s23, %s644_s24  }
   0x7   :  { %s645_s25 = smov [#allocation4]   ;;  %s43_s1 = sshll.u32 %s732_s2, 4  ;;  %s44_s1 = int_to_ptr.hbm [resolvable:$true] %s43_s1 }
   0x8   :  { %s19_s26 = sshll.u32 %s645_s25, 4  ;;  %s57_s30 = sshll.u32 %s733_s3, 4  ;;  %s20_s26 = int_to_ptr.vmem [resolvable:$true] %s19_s26  ;;  %s58_s30 = int_to_ptr.hbm [resolvable:$true] %s57_s30 }
   0x9   :  { %25 = dma.hbm_to_vmem [thread:$0]  %s18_s22, 512, %s20_s26, [#allocation5], %s643_s23, %s643_s23, %s644_s24  }
   0xa   :  { %s646_s5 = smov [#allocation9]   ;;  %s647_s7 = smov [#allocation10]  }
   0xb   :  { %s45_s6 = sshll.u32 %s646_s5, 4  ;;  %s59_s2 = sshll.u32 %s647_s7, 4  ;;  %s46_s6 = int_to_ptr.vmem [resolvable:$true] %s45_s6  ;;  %s60_s2 = int_to_ptr.vmem [resolvable:$true] %s59_s2 }
   0xc   :  { %51 = dma.hbm_to_vmem [thread:$0]  %s44_s1, 6144, %s46_s6, [#allocation8], %s643_s23, %s643_s23, %s644_s24  }
   0xd   :  { %62 = dma.hbm_to_vmem [thread:$0]  %s58_s30, 64, %s60_s2, [#allocation11]  }
   0xe   :  { %634 = dma.done.wait [#allocation5], 512  }
   0xf   :  { %635 = vsyncadd [#allocation5], 4294966784 }
  0x10   :  { %636 = dma.done.wait [#allocation8], 12288  }
  0x11   :  { %637 = vsyncadd [#allocation8], 4294955008 }
  0x12   :  { %638 = dma.done.wait [#allocation11], 64  }
  0x13   :  { %639 = vsyncadd [#allocation11], 4294967232  ;;  %v648_v0 = vmov 0.0   ;;  %v214_v1 = vld [vmem:[#allocation7 + $0x178] sm:$0xff]  ;;  %v213_v2 = vld [vmem:[#allocation7 + $0x170] sm:$0xff]  ;;  %s649_s3 = smov [#allocation12]  }
  0x14   :  { %83 = vst [vmem:[#allocation2] sm:$0x1] %v648_v0  ;;  %v135_v3 = vld [vmem:[#allocation7 + $0xf8] sm:$0xff]  ;;  %215 = vmatpush.msra.mxu2 %v214_v1  ;;  %v134_v5 = vld [vmem:[#allocation7 + $0xf0] sm:$0xff]  ;;  %v212_v6 = vld [vmem:[#allocation7 + $0x168] sm:$0xff]  ;;  %s453_s8 = sshll.u32 %s649_s3, 4  ;;  %s454_s8 = int_to_ptr.vmem [resolvable:$true] %s453_s8 }
  0x15   :  { %84 = vst [vmem:[#allocation2 + $0x18] sm:$0x1] %v648_v0  ;;  %136 = vmatpush.msra.mxu0 %v135_v3  ;;  %v114_v4 = vld [vmem:[#allocation7 + $0x78] sm:$0xff]  ;;  %v113_v7 = vld [vmem:[#allocation7 + $0x70] sm:$0xff]  ;;  %v133_v8 = vld [vmem:[#allocation7 + $0xe8] sm:$0xff]  ;;  %s455_s11 = sshll.u32 %s734_s4, 4  ;;  %s456_s11 = int_to_ptr.hbm [resolvable:$true] %s455_s11 }
  0x16   :  { %85 = vst [vmem:[#allocation2 + $0x11] sm:$0x1] %v648_v0  ;;  %165 = vmatpush.msra.mxu1 %v114_v4  ;;  %216 = vmatpush.msra.mxu2 %v213_v2  ;;  %v112_v9 = vld [vmem:[#allocation7 + $0x68] sm:$0xff]  ;;  %v211_v10 = vld [vmem:[#allocation7 + $0x160] sm:$0xff]  ;;  %v210_v13 = vld [vmem:[#allocation7 + $0x158] sm:$0xff] }
  0x17   :  { %86 = vst [vmem:[#allocation2 + $0x29] sm:$0x1] %v648_v0  ;;  %137 = vmatpush.msra.mxu0 %v134_v5  ;;  %v132_v11 = vld [vmem:[#allocation7 + $0xe0] sm:$0xff]  ;;  %v131_v14 = vld [vmem:[#allocation7 + $0xd8] sm:$0xff]  ;;  %v209_v16 = vld [vmem:[#allocation7 + $0x150] sm:$0xff] }
  0x18   :  { %262 = vst [vmem:[#allocation3] sm:$0x1] %v648_v0  ;;  %166 = vmatpush.msra.mxu1 %v113_v7  ;;  %217 = vmatpush.msra.mxu2 %v212_v6  ;;  %v111_v12 = vld [vmem:[#allocation7 + $0x60] sm:$0xff]  ;;  %v110_v15 = vld [vmem:[#allocation7 + $0x58] sm:$0xff]  ;;  %v130_v17 = vld [vmem:[#allocation7 + $0xd0] sm:$0xff] }
  0x19   :  { %263 = vst [vmem:[#allocation3 + $0x18] sm:$0x1] %v648_v0  ;;  %138 = vmatpush.msra.mxu0 %v133_v8  ;;  %v109_v18 = vld [vmem:[#allocation7 + $0x50] sm:$0xff]  ;;  %v208_v19 = vld [vmem:[#allocation7 + $0x148] sm:$0xff]  ;;  %v207_v22 = vld [vmem:[#allocation7 + $0x140] sm:$0xff] }
  0x1a   :  { %264 = vst [vmem:[#allocation3 + $0x11] sm:$0x1] %v648_v0  ;;  %167 = vmatpush.msra.mxu1 %v112_v9  ;;  %218 = vmatpush.msra.mxu2 %v211_v10  ;;  %v129_v20 = vld [vmem:[#allocation7 + $0xc8] sm:$0xff]  ;;  %v128_v23 = vld [vmem:[#allocation7 + $0xc0] sm:$0xff]  ;;  %v206_v25 = vld [vmem:[#allocation7 + $0x138] sm:$0xff] }
  0x1b   :  { %265 = vst [vmem:[#allocation3 + $0x29] sm:$0x1] %v648_v0  ;;  %139 = vmatpush.msra.mxu0 %v132_v11  ;;  %v108_v21 = vld [vmem:[#allocation7 + $0x48] sm:$0xff]  ;;  %v107_v24 = vld [vmem:[#allocation7 + $0x40] sm:$0xff]  ;;  %v127_v26 = vld [vmem:[#allocation7 + $0xb8] sm:$0xff] }
  0x1c   :  { %168 = vmatpush.msra.mxu1 %v111_v12  ;;  %219 = vmatpush.msra.mxu2 %v210_v13  ;;  %v696_v27 = vld [vmem:[#allocation4] sm:$0xff]  ;;  %v205_v28 = vld [vmem:[#allocation7 + $0x130] sm:$0xff]  ;;  %v106_v29 = vld [vmem:[#allocation7 + $0x38] sm:$0xff] }
  0x1d   :  { %140 = vmatpush.msra.mxu0 %v131_v14  ;;  %v698_v30 = vld [vmem:[#allocation4 + $0x8] sm:$0xff]  ;;  %91 = vst [vmem:[#allocation2 + $0x1] sm:$0xff] %v696_v27  ;;  %v126_v32 = vld [vmem:[#allocation7 + $0xb0] sm:$0xff]  ;;  %v704_v35 = vld [vmem:[#allocation4 + $0x18] sm:$0xff] }
  0x1e   :  { %169 = vmatpush.msra.mxu1 %v110_v15  ;;  %220 = vmatpush.msra.mxu2 %v209_v16  ;;  %v204_v31 = vld [vmem:[#allocation7 + $0x128] sm:$0xff]  ;;  %v105_v33 = vld [vmem:[#allocation7 + $0x30] sm:$0xff]  ;;  %92 = vst [vmem:[#allocation2 + $0x9] sm:$0xff] %v698_v30  ;;  %v203_v38 = vld [vmem:[#allocation7 + $0x120] sm:$0xff] }
  0x1f   :  { %141 = vmatpush.msra.mxu0 %v130_v17  ;;  %v702_v34 = vld [vmem:[#allocation4 + $0x10] sm:$0xff]  ;;  %v125_v36 = vld [vmem:[#allocation7 + $0xa8] sm:$0xff]  ;;  %94 = vst [vmem:[#allocation2 + $0x21] sm:$0xff] %v704_v35  ;;  %v124_v39 = vld [vmem:[#allocation7 + $0xa0] sm:$0xff] }
  0x20   :  { %170 = vmatpush.msra.mxu1 %v109_v18  ;;  %221 = vmatpush.msra.mxu2 %v208_v19  ;;  %93 = vst [vmem:[#allocation2 + $0x19] sm:$0xff] %v702_v34  ;;  %v104_v37 = vld [vmem:[#allocation7 + $0x28] sm:$0xff]  ;;  %v103_v40 = vld [vmem:[#allocation7 + $0x20] sm:$0xff]  ;;  %v202_v41 = vld [vmem:[#allocation7 + $0x118] sm:$0xff] }
  0x21   :  { %142 = vmatpush.msra.mxu0 %v129_v20  ;;  %v123_v42 = vld [vmem:[#allocation7 + $0x98] sm:$0xff]  ;;  %v201_v44 = vld [vmem:[#allocation7 + $0x110] sm:$0xff]  ;;  %v200_v47 = vld [vmem:[#allocation7 + $0x108] sm:$0xff] }
  0x22   :  { %171 = vmatpush.msra.mxu1 %v108_v21  ;;  %222 = vmatpush.msra.mxu2 %v207_v22  ;;  %v102_v43 = vld [vmem:[#allocation7 + $0x18] sm:$0xff]  ;;  %v122_v45 = vld [vmem:[#allocation7 + $0x90] sm:$0xff]  ;;  %v121_v48 = vld [vmem:[#allocation7 + $0x88] sm:$0xff] }
  0x23   :  { %143 = vmatpush.msra.mxu0 %v128_v23  ;;  %v101_v46 = vld [vmem:[#allocation7 + $0x10] sm:$0xff]  ;;  %v310_v49 = vld [vmem:[#allocation9 + $0xf8] sm:$0xff]  ;;  %v100_v50 = vld [vmem:[#allocation7 + $0x8] sm:$0xff] }
  0x24   :  { %172 = vmatpush.msra.mxu1 %v107_v24  ;;  %223 = vmatpush.msra.mxu2 %v206_v25  ;;  %v309_v51 = vld [vmem:[#allocation9 + $0xf0] sm:$0xff]  ;;  %v199_v52 = vld [vmem:[#allocation7 + $0x100] sm:$0xff]  ;;  %v289_v57 = vld [vmem:[#allocation9 + $0x78] sm:$0xff] }
  0x25   :  { %144 = vmatpush.msra.mxu0 %v127_v26  ;;  %v120_v53 = vld [vmem:[#allocation7 + $0x80] sm:$0xff]  ;;  %311 = vmatpush.msra.mxu3 %v310_v49  ;;  %v308_v58 = vld [vmem:[#allocation9 + $0xe8] sm:$0xff]  ;;  %v708_v59 = vld [vmem:[#allocation9 + $0x178] sm:$0xff] }
  0x26   :  { %173 = vmatpush.msra.mxu1 %v106_v29  ;;  %224 = vmatpush.msra.mxu2 %v205_v28  ;;  %v194_v54 = vld [vmem:[#allocation2 + $0x2] sm:$0xff]  ;;  %v288_v60 = vld [vmem:[#allocation9 + $0x70] sm:$0xff]  ;;  %v306_v0 = vld [vmem:[#allocation9 + $0xd8] sm:$0xff] }
  0x27   :  { %145 = vmatpush.msra.mxu0 %v126_v32  ;;  %v99_v55 = vld [vmem:[#allocation7] sm:$0xff]  ;;  %312 = vmatpush.msra.mxu3 %v309_v51  ;;  %v711_v62 = vld [vmem:[#allocation9 + $0x170] sm:$0xff]  ;;  %v287_v63 = vld [vmem:[#allocation9 + $0x68] sm:$0xff] }
  0x28   :  { %174 = vmatpush.msra.mxu1 %v105_v33  ;;  %225 = vmatpush.msra.mxu2 %v204_v31  ;;  %v95_v56 = vld [vmem:[#allocation2] sm:$0xff]  ;;  %v195_v1 = vld [vmem:[#allocation2 + $0xa] sm:$0xff]  ;;  %v285_v4 = vld [vmem:[#allocation9 + $0x58] sm:$0xff] }
  0x29   :  { %146 = vmatpush.msra.mxu0 %v125_v36  ;;  %v307_v61 = vld [vmem:[#allocation9 + $0xe0] sm:$0xff]  ;;  %313 = vmatpush.msra.mxu3 %v308_v58  ;;  %v96_v3 = vld [vmem:[#allocation2 + $0x8] sm:$0xff]  ;;  %v305_v5 = vld [vmem:[#allocation9 + $0xd0] sm:$0xff] }
  0x2a   :  { %175 = vmatpush.msra.mxu1 %v104_v37  ;;  %226 = vmatpush.msra.mxu2 %v203_v38  ;;  %v286_v2 = vld [vmem:[#allocation9 + $0x60] sm:$0xff]  ;;  %v284_v6 = vld [vmem:[#allocation9 + $0x50] sm:$0xff]  ;;  %v97_v8 = vld [vmem:[#allocation2 + $0x18] sm:$0xff] }
  0x2b   :  { %147 = vmatpush.msra.mxu0 %v124_v39  ;;  %314 = vmatpush.msra.mxu3 %v307_v61  ;;  %v196_v7 = vld [vmem:[#allocation2 + $0x1a] sm:$0xff]  ;;  %v197_v9 = vld [vmem:[#allocation2 + $0x22] sm:$0xff]  ;;  %v301_v14 = vld [vmem:[#allocation9 + $0xb0] sm:$0xff] }
  0x2c   :  { %176 = vmatpush.msra.mxu1 %v103_v40  ;;  %227 = vmatpush.msra.mxu2 %v202_v41  ;;  %v98_v10 = vld [vmem:[#allocation2 + $0x20] sm:$0xff]  ;;  %v304_v11 = vld [vmem:[#allocation9 + $0xc8] sm:$0xff]  ;;  %v302_v13 = vld [vmem:[#allocation9 + $0xb8] sm:$0xff] }
  0x2d   :  { %148 = vmatpush.msra.mxu0 %v123_v42  ;;  %315 = vmatpush.msra.mxu3 %v306_v0  ;;  %v303_v12 = vld [vmem:[#allocation9 + $0xc0] sm:$0xff]  ;;  %v283_v15 = vld [vmem:[#allocation9 + $0x48] sm:$0xff]  ;;  %v281_v21 = vld [vmem:[#allocation9 + $0x38] sm:$0xff] }
  0x2e   :  { %177 = vmatpush.msra.mxu1 %v102_v43  ;;  %228 = vmatpush.msra.mxu2 %v201_v44  ;;  %v387_v16 = vld [vmem:[#allocation9 + $0x168] sm:$0xff]  ;;  %v282_v18 = vld [vmem:[#allocation9 + $0x40] sm:$0xff]  ;;  %v385_v22 = vld [vmem:[#allocation9 + $0x158] sm:$0xff] }
  0x2f   :  { %149 = vmatpush.msra.mxu0 %v122_v45  ;;  %316 = vmatpush.msra.mxu3 %v305_v5  ;;  %v300_v17 = vld [vmem:[#allocation9 + $0xa8] sm:$0xff]  ;;  %v386_v19 = vld [vmem:[#allocation9 + $0x160] sm:$0xff]  ;;  %v298_v23 = vld [vmem:[#allocation9 + $0x98] sm:$0xff] }
  0x30   :  { %178 = vmatpush.msra.mxu1 %v101_v46  ;;  %229 = vmatpush.msra.mxu2 %v200_v47  ;;  %v299_v20 = vld [vmem:[#allocation9 + $0xa0] sm:$0xff]  ;;  %v280_v24 = vld [vmem:[#allocation9 + $0x30] sm:$0xff]  ;;  %v279_v28 = vld [vmem:[#allocation9 + $0x28] sm:$0xff] }
  0x31   :  { %150 = vmatpush.msra.mxu0 %v121_v48  ;;  %317 = vmatpush.msra.mxu3 %v304_v11  ;;  %v384_v25 = vld [vmem:[#allocation9 + $0x150] sm:$0xff]  ;;  %v383_v29 = vld [vmem:[#allocation9 + $0x148] sm:$0xff]  ;;  %v278_v32 = vld [vmem:[#allocation9 + $0x20] sm:$0xff] }
  0x32   :  { %179 = vmatpush.msra.mxu1 %v100_v50  ;;  %230 = vmatpush.msra.mxu2 %v199_v52  ;;  %v297_v26 = vld [vmem:[#allocation9 + $0x90] sm:$0xff]  ;;  %v296_v31 = vld [vmem:[#allocation9 + $0x88] sm:$0xff]  ;;  %v382_v33 = vld [vmem:[#allocation9 + $0x140] sm:$0xff] }
  0x33   :  { %151 = vmatpush.msra.mxu0 %v120_v53  ;;  %231 = vmatmul.f32.vlgmr.msra.gmra.mxu2 %v194_v54  ;;  %v295_v36 = vld [vmem:[#allocation9 + $0x80] sm:$0xff]  ;;  %v277_v37 = vld [vmem:[#allocation9 + $0x18] sm:$0xff]  ;;  %v276_v39 = vld [vmem:[#allocation9 + $0x10] sm:$0xff] }
  0x34   :  { %180 = vmatpush.msra.mxu1 %v99_v55  ;;  %152 = vmatmul.f32.vlgmr.msra.gmra.mxu0 %v696_v27  ;;  %v381_v38 = vld [vmem:[#allocation9 + $0x138] sm:$0xff]  ;;  %v380_v40 = vld [vmem:[#allocation9 + $0x130] sm:$0xff]  ;;  %v275_v41 = vld [vmem:[#allocation9 + $0x8] sm:$0xff] }
  0x35   :  { %181 = vmatmul.f32.vlgmr.msra.gmra.mxu1 %v95_v56  ;;  %340 = vmatpush.msrb.mxu0 %v289_v57  ;;  %v379_v42 = vld [vmem:[#allocation9 + $0x128] sm:$0xff]  ;;  %v274_v43 = vld [vmem:[#allocation9] sm:$0xff]  ;;  %v377_v45 = vld [vmem:[#allocation9 + $0x118] sm:$0xff] }
  0x36   :  { %390 = vmatpush.msrb.mxu1 %v708_v59  ;;  %470 = vmatpush.msrb.mxu2 %v289_v57  ;;  %v378_v44 = vld [vmem:[#allocation9 + $0x120] sm:$0xff]  ;;  %v376_v46 = vld [vmem:[#allocation9 + $0x110] sm:$0xff]  ;;  %v375_v47 = vld [vmem:[#allocation9 + $0x108] sm:$0xff] }
  0x37   :  { %341 = vmatpush.msrb.mxu0 %v288_v60  ;;  %318 = vmatpush.msra.mxu3 %v303_v12  ;;  %v374_v48 = vld [vmem:[#allocation9 + $0x100] sm:$0xff] }
  0x38   :  { %391 = vmatpush.msrb.mxu1 %v711_v62  ;;  %471 = vmatpush.msrb.mxu2 %v288_v60  ;;  %v510_v52 = vld [vmem:[#allocation10] ss:$0 sm:$0xff]  ;;  %v511_v55 = vld [vmem:[#allocation10 + $0x1] ss:$0 sm:$0xff] }
  0x39   :  { %342 = vmatpush.msrb.mxu0 %v287_v63  ;;  %319 = vmatpush.msra.mxu3 %v302_v13 }
  0x3a   :  { %472 = vmatpush.msrb.mxu2 %v287_v63  ;;  %392 = vmatpush.msrb.mxu1 %v387_v16 }
  0x3b   :  { %234 = vmatmul.f32.gmra.mxu2 %v195_v1  ;;  %343 = vmatpush.msrb.mxu0 %v286_v2 }
  0x3c   :  { %155 = vmatmul.f32.gmra.mxu0 %v698_v30  ;;  %473 = vmatpush.msrb.mxu2 %v286_v2 }
  0x3d   :  { %184 = vmatmul.f32.gmra.mxu1 %v96_v3  ;;  %344 = vmatpush.msrb.mxu0 %v285_v4 }
  0x3e   :  { %474 = vmatpush.msrb.mxu2 %v285_v4  ;;  %320 = vmatpush.msra.mxu3 %v301_v14 }
  0x3f   :  { %345 = vmatpush.msrb.mxu0 %v284_v6  ;;  %393 = vmatpush.msrb.mxu1 %v386_v19 }
  0x40   :  { %475 = vmatpush.msrb.mxu2 %v284_v6  ;;  %321 = vmatpush.msra.mxu3 %v300_v17 }
  0x41   :  { %346 = vmatpush.msrb.mxu0 %v283_v15  ;;  %394 = vmatpush.msrb.mxu1 %v385_v22 }
  0x42   :  { %476 = vmatpush.msrb.mxu2 %v283_v15  ;;  %322 = vmatpush.msra.mxu3 %v299_v20 }
  0x43   :  { %237 = vmatmul.f32.gmra.mxu2 %v196_v7  ;;  %347 = vmatpush.msrb.mxu0 %v282_v18 }
  0x44   :  { %158 = vmatmul.f32.gmra.mxu0 %v702_v34  ;;  %477 = vmatpush.msrb.mxu2 %v282_v18 }
  0x45   :  { %187 = vmatmul.f32.gmra.mxu1 %v97_v8  ;;  %348 = vmatpush.msrb.mxu0 %v281_v21 }
  0x46   :  { %323 = vmatpush.msra.mxu3 %v298_v23  ;;  %478 = vmatpush.msrb.mxu2 %v281_v21 }
  0x47   :  { %349 = vmatpush.msrb.mxu0 %v280_v24  ;;  %395 = vmatpush.msrb.mxu1 %v384_v25 }
  0x48   :  { %324 = vmatpush.msra.mxu3 %v297_v26  ;;  %479 = vmatpush.msrb.mxu2 %v280_v24 }
  0x49   :  { %350 = vmatpush.msrb.mxu0 %v279_v28  ;;  %396 = vmatpush.msrb.mxu1 %v383_v29 }
  0x4a   :  { %325 = vmatpush.msra.mxu3 %v296_v31  ;;  %480 = vmatpush.msrb.mxu2 %v279_v28 }
  0x4b   :  { %240 = vmatmul.f32.gmra.mxu2 %v197_v9  ;;  %351 = vmatpush.msrb.mxu0 %v278_v32 }
  0x4c   :  { %161 = vmatmul.f32.gmra.mxu0 %v704_v35  ;;  %397 = vmatpush.msrb.mxu1 %v382_v33 }
  0x4d   :  { %190 = vmatmul.f32.gmra.mxu1 %v98_v10  ;;  %326 = vmatpush.msra.mxu3 %v295_v36 }
  0x4e   :  { %481 = vmatpush.msrb.mxu2 %v278_v32  ;;  %352 = vmatpush.msrb.mxu0 %v277_v37 }
  0x4f   :  { %398 = vmatpush.msrb.mxu1 %v381_v38  ;;  %486 = vmatpush.msrb.mxu3 %v708_v59 }
  0x50   :  { %482 = vmatpush.msrb.mxu2 %v277_v37  ;;  %353 = vmatpush.msrb.mxu0 %v276_v39 }
  0x51   :  { %399 = vmatpush.msrb.mxu1 %v380_v40  ;;  %487 = vmatpush.msrb.mxu3 %v711_v62 }
  0x52   :  { %483 = vmatpush.msrb.mxu2 %v276_v39  ;;  %354 = vmatpush.msrb.mxu0 %v275_v41 }
  0x53   :  { %400 = vmatpush.msrb.mxu1 %v379_v42  ;;  %488 = vmatpush.msrb.mxu3 %v387_v16 }
  0x54   :  { %484 = vmatpush.msrb.mxu2 %v275_v41  ;;  %355 = vmatpush.msrb.mxu0 %v274_v43 }
  0x55   :  { %401 = vmatpush.msrb.mxu1 %v378_v44  ;;  %489 = vmatpush.msrb.mxu3 %v386_v19 }
  0x56   :  { %485 = vmatpush.msrb.mxu2 %v274_v43 }
  0x57   :  { %402 = vmatpush.msrb.mxu1 %v377_v45  ;;  %490 = vmatpush.msrb.mxu3 %v385_v22 }
  0x59   :  { %403 = vmatpush.msrb.mxu1 %v376_v46  ;;  %491 = vmatpush.msrb.mxu3 %v384_v25 }
  0x5b   :  { %404 = vmatpush.msrb.mxu1 %v375_v47  ;;  %492 = vmatpush.msrb.mxu3 %v383_v29 }
  0x5d   :  { %405 = vmatpush.msrb.mxu1 %v374_v48  ;;  %493 = vmatpush.msrb.mxu3 %v382_v33  ;;  %v512_v33 = vld [vmem:[#allocation10 + $0x2] ss:$0 sm:$0xff] }
  0x5f   :  { %494 = vmatpush.msrb.mxu3 %v381_v38  ;;  %v513_v38 = vld [vmem:[#allocation10 + $0x3] ss:$0 sm:$0xff] }
  0x61   :  { %495 = vmatpush.msrb.mxu3 %v380_v40 }
  0x63   :  { %496 = vmatpush.msrb.mxu3 %v379_v42 }
  0x65   :  { %497 = vmatpush.msrb.mxu3 %v378_v44 }
  0x67   :  { %498 = vmatpush.msrb.mxu3 %v377_v45 }
  0x69   :  { %499 = vmatpush.msrb.mxu3 %v376_v46 }
  0x6b   :  { %500 = vmatpush.msrb.mxu3 %v375_v47 }
  0x6d   :  { %501 = vmatpush.msrb.mxu3 %v374_v48 }
  0xb1   :  { %v153_v49 = vpop.f32.mrf.mxu0 }
  0xb2   :  { %v182_v50 = vpop.f32.mrf.mxu1 }
  0xb3   :  { %v183_v51 = vadd.f32 %v182_v50, %v153_v49 }
  0xb6   :  { %v232_v53 = vpop.f32.mrf.mxu2 }
  0xb7   :  { %v244_v54 = vadd.f32 %v232_v53, %v183_v51 }
  0xb9   :  { %v249_v56 = vmul.f32 %v510_v52, %v244_v54  ;;  %v156_v57 = vpop.f32.mrf.mxu0 }
  0xba   :  { %v185_v58 = vpop.f32.mrf.mxu1 }
  0xbb   :  { %v254_v59 = vadd.f32 %v511_v55, %v249_v56  ;;  %v186_v60 = vadd.f32 %v185_v58, %v156_v57 }
  0xbd   :  { %v258_v61 = vmax.f32 %v254_v59, 0.0 }
  0xbe   :  { %v235_v62 = vpop.f32.mrf.mxu2 }
  0xbf   :  { %266 = vst [vmem:[#allocation3 + $0x1] sm:$0xff] %v258_v61  ;;  %v245_v63 = vadd.f32 %v235_v62, %v186_v60  ;;  %327 = vmatmul.f32.vlgmr.msra.gmra.mxu3 %v258_v61 }
  0xc1   :  { %v250_v0 = vmul.f32 %v510_v52, %v245_v63  ;;  %v159_v1 = vpop.f32.mrf.mxu0 }
  0xc2   :  { %v188_v2 = vpop.f32.mrf.mxu1 }
  0xc3   :  { %v255_v3 = vadd.f32 %v511_v55, %v250_v0  ;;  %v189_v4 = vadd.f32 %v188_v2, %v159_v1 }
  0xc5   :  { %v259_v5 = vmax.f32 %v255_v3, 0.0 }
  0xc6   :  { %v238_v6 = vpop.f32.mrf.mxu2  ;;  %v270_v7 = vld [vmem:[#allocation3] sm:$0xff] }
  0xc7   :  { %267 = vst [vmem:[#allocation3 + $0x9] sm:$0xff] %v259_v5  ;;  %v246_v8 = vadd.f32 %v238_v6, %v189_v4  ;;  %356 = vmatmul.f32.vlgmr.msrb.gmra.mxu0 %v270_v7  ;;  %330 = vmatmul.f32.gmra.mxu3 %v259_v5 }
  0xc9   :  { %v251_v9 = vmul.f32 %v510_v52, %v246_v8  ;;  %v162_v10 = vpop.f32.mrf.mxu0 }
  0xca   :  { %v191_v11 = vpop.f32.mrf.mxu1 }
  0xcb   :  { %v256_v12 = vadd.f32 %v511_v55, %v251_v9  ;;  %v192_v13 = vadd.f32 %v191_v11, %v162_v10 }
  0xcd   :  { %v260_v14 = vmax.f32 %v256_v12, 0.0 }
  0xce   :  { %v241_v15 = vpop.f32.mrf.mxu2  ;;  %v271_v16 = vld [vmem:[#allocation3 + $0x8] sm:$0xff] }
  0xcf   :  { %v369_v17 = vld [vmem:[#allocation3 + $0x2] sm:$0xff]  ;;  %268 = vst [vmem:[#allocation3 + $0x19] sm:$0xff] %v260_v14  ;;  %v247_v18 = vadd.f32 %v241_v15, %v192_v13  ;;  %359 = vmatmul.f32.gmra.mxu0 %v271_v16  ;;  %333 = vmatmul.f32.gmra.mxu3 %v260_v14  ;;  %v370_v23 = vld [vmem:[#allocation3 + $0xa] sm:$0xff] }
  0xd0   :  { %406 = vmatmul.f32.vlgmr.msrb.gmra.mxu1 %v369_v17 }
  0xd1   :  { %v252_v19 = vmul.f32 %v510_v52, %v247_v18 }
  0xd3   :  { %v257_v20 = vadd.f32 %v511_v55, %v252_v19 }
  0xd5   :  { %v261_v21 = vmax.f32 %v257_v20, 0.0 }
  0xd6   :  { %v272_v22 = vld [vmem:[#allocation3 + $0x18] sm:$0xff] }
  0xd7   :  { %269 = vst [vmem:[#allocation3 + $0x21] sm:$0xff] %v261_v21  ;;  %362 = vmatmul.f32.vlgmr.msrb.gmra.mxu2 %v272_v22  ;;  %336 = vmatmul.f32.gmra.mxu3 %v261_v21 }
  0xd8   :  { %409 = vmatmul.f32.gmra.mxu1 %v370_v23 }
  0xde   :  { %v273_v24 = vld [vmem:[#allocation3 + $0x20] sm:$0xff] }
  0xdf   :  { %v371_v25 = vld [vmem:[#allocation3 + $0x1a] sm:$0xff]  ;;  %365 = vmatmul.f32.gmra.mxu2 %v273_v24  ;;  %v372_v26 = vld [vmem:[#allocation3 + $0x22] sm:$0xff] }
  0xe0   :  { %412 = vmatmul.f32.vlgmr.msrb.gmra.mxu3 %v371_v25 }
  0xe8   :  { %415 = vmatmul.f32.gmra.mxu3 %v372_v26 }
 0x142   :  { %v328_v28 = vpop.f32.mrf.mxu3 }
 0x144   :  { %v357_v29 = vpop.f32.mrf.mxu0 }
 0x145   :  { %v358_v32 = vadd.f32 %v357_v29, %v328_v28 }
 0x14a   :  { %v331_v31 = vpop.f32.mrf.mxu3 }
 0x14c   :  { %v360_v40 = vpop.f32.mrf.mxu0 }
 0x14d   :  { %v407_v36 = vpop.f32.mrf.mxu1  ;;  %v361_v43 = vadd.f32 %v360_v40, %v331_v31 }
 0x14e   :  { %v419_v37 = vadd.f32 %v407_v36, %v358_v32 }
 0x150   :  { %v424_v39 = vmul.f32 %v512_v33, %v419_v37 }
 0x152   :  { %v429_v41 = vadd.f32 %v513_v38, %v424_v39  ;;  %v334_v44 = vpop.f32.mrf.mxu3 }
 0x154   :  { %v437_v42 = vadd.f32 %v429_v41, %v696_v27 }
 0x155   :  { %v410_v45 = vpop.f32.mrf.mxu1 }
 0x156   :  { %v441_v46 = vmax.f32 %v437_v42, 0.0  ;;  %v420_v47 = vadd.f32 %v410_v45, %v361_v43 }
 0x158   :  { %445 = vst [vmem:[#allocation12] sm:$0xff] %v441_v46  ;;  %v425_v48 = vmul.f32 %v512_v33, %v420_v47 }
 0x15a   :  { %v430_v49 = vadd.f32 %v513_v38, %v425_v48  ;;  %v337_v51 = vpop.f32.mrf.mxu3  ;;  %v363_v53 = vpop.f32.mrf.mxu2 }
 0x15b   :  { %v364_v54 = vadd.f32 %v363_v53, %v334_v44 }
 0x15c   :  { %v438_v50 = vadd.f32 %v430_v49, %v698_v30 }
 0x15e   :  { %v442_v52 = vmax.f32 %v438_v50, 0.0 }
 0x160   :  { %446 = vst [vmem:[#allocation12 + $0x8] sm:$0xff] %v442_v52 }
 0x162   :  { %v366_v58 = vpop.f32.mrf.mxu2 }
 0x163   :  { %v413_v55 = vpop.f32.mrf.mxu3  ;;  %v367_v59 = vadd.f32 %v366_v58, %v337_v51 }
 0x164   :  { %v421_v56 = vadd.f32 %v413_v55, %v364_v54 }
 0x166   :  { %v426_v57 = vmul.f32 %v512_v33, %v421_v56 }
 0x168   :  { %v431_v27 = vadd.f32 %v513_v38, %v426_v57 }
 0x16a   :  { %v439_v60 = vadd.f32 %v431_v27, %v702_v34 }
 0x16b   :  { %v416_v61 = vpop.f32.mrf.mxu3 }
 0x16c   :  { %v443_v62 = vmax.f32 %v439_v60, 0.0  ;;  %v422_v63 = vadd.f32 %v416_v61, %v367_v59 }
 0x16e   :  { %447 = vst [vmem:[#allocation12 + $0x10] sm:$0xff] %v443_v62  ;;  %v427_v0 = vmul.f32 %v512_v33, %v422_v63 }
 0x170   :  { %v432_v1 = vadd.f32 %v513_v38, %v427_v0 }
 0x172   :  { %v440_v30 = vadd.f32 %v432_v1, %v704_v35 }
 0x174   :  { %v444_v2 = vmax.f32 %v440_v30, 0.0 }
 0x176   :  { %448 = vst [vmem:[#allocation12 + $0x18] sm:$0xff] %v444_v2 }
 0x177   :  { %461 = dma.vmem_to_hbm [thread:$0]  %s454_s8, 512, %s456_s11, [#allocation6], %s643_s23, %s643_s23, %s644_s24  }
 0x178   :  { %640 = dma.done.wait [#allocation6], 512  }
 0x179   :  { %641 = vsyncadd [#allocation6], 4294966784 }
 0x17a   :  { %466 = vsyncpa [#allocation5], 1 }
 0x17b   :  { %467 = vsyncpa [#allocation8], 1 }
 0x17c   :  { %468 = vsyncpa [#allocation11], 1 }
 0x17d   :  { %469 = vsyncpa [#allocation6], 1 }

</bundles_post_ra>
